<compile_context>
chip_gen: v7x
topology: tpu7x:2x2x1
jax: 0.10.0
libtpu: 0.0.40
codegen_flags: <defaults>
</compile_context>

<pallas_src>
import jax
import jax.numpy as jnp
from jax.experimental import pallas as pl
from jax.experimental.pallas import tpu as pltpu


def _lstm_recurrence_kernel(gx0_ref,    # (Tt, 4, B, H)  precomputed x@W_ih0 + b0, gate-major
                            whh0_ref,   # (4, H, H)      layer-0 recurrent weights (per gate)
                            wih1_ref,   # (4, H, H)      layer-1 input weights (per gate)
                            whh1_ref,   # (4, H, H)      layer-1 recurrent weights (per gate)
                            b1_ref,     # (4, 1, H)      layer-1 bias (b_ih + b_hh, per gate)
                            h1seq_ref,  # (Tt, B, H)     output: layer-1 hidden states
                            h0_s, c0_s, h1_s, c1_s):     # VMEM scratch (B, H) f32 state carry
    tb = pl.program_id(0)

    @pl.when(tb == 0)
    def _():
        h0_s[...] = jnp.zeros_like(h0_s)
        c0_s[...] = jnp.zeros_like(c0_s)
        h1_s[...] = jnp.zeros_like(h1_s)
        c1_s[...] = jnp.zeros_like(c1_s)

    n_steps = gx0_ref.shape[0]

    def mm(a, w):
        return jnp.dot(a, w, preferred_element_type=jnp.float32)

    def step(t, carry):
        h0, c0, h1, c1 = carry

        # ---- layer 0 (input projection already hoisted out of the loop) ----
        gx = gx0_ref[t]                                   # (4, B, H)
        i0 = jax.nn.sigmoid(gx[0] + mm(h0, whh0_ref[0]))
        f0 = jax.nn.sigmoid(gx[1] + mm(h0, whh0_ref[1]))
        g0 = jnp.tanh(      gx[2] + mm(h0, whh0_ref[2]))
        o0 = jax.nn.sigmoid(gx[3] + mm(h0, whh0_ref[3]))
        c0n = f0 * c0 + i0 * g0
        h0n = o0 * jnp.tanh(c0n)

        # ---- layer 1 ----
        i1 = jax.nn.sigmoid(mm(h0n, wih1_ref[0]) + mm(h1, whh1_ref[0]) + b1_ref[0])
        f1 = jax.nn.sigmoid(mm(h0n, wih1_ref[1]) + mm(h1, whh1_ref[1]) + b1_ref[1])
        g1 = jnp.tanh(      mm(h0n, wih1_ref[2]) + mm(h1, whh1_ref[2]) + b1_ref[2])
        o1 = jax.nn.sigmoid(mm(h0n, wih1_ref[3]) + mm(h1, whh1_ref[3]) + b1_ref[3])
        c1n = f1 * c1 + i1 * g1
        h1n = o1 * jnp.tanh(c1n)

        h1seq_ref[t] = h1n                                # lane-dense (B, H) store
        return (h0n, c0n, h1n, c1n)

    carry0 = (h0_s[...], c0_s[...], h1_s[...], c1_s[...])
    h0, c0, h1, c1 = jax.lax.fori_loop(0, n_steps, step, carry0)

    # Persist recurrent state across time-block grid iterations.
    h0_s[...] = h0
    c0_s[...] = c0
    h1_s[...] = h1
    c1_s[...] = c1


def _round_up(x, m):
    return (x + m - 1) // m * m


@jax.jit
def lstm_model_forward(x_ids, params):
    """x_ids: (B, T) int32 token ids. Returns (B, T, O) float32."""
    emb_table = params["embedding"]                        # (V, H)
    w_ih0, w_hh0, b0 = params["w_ih0"], params["w_hh0"], params["b0"]
    w_ih1, w_hh1, b1 = params["w_ih1"], params["w_hh1"], params["b1"]
    w_fc, b_fc = params["w_fc"], params["b_fc"]

    B, T = x_ids.shape
    H = emb_table.shape[1]

    # Glue (XLA): embedding gather directly in time-major order (no extra transpose).
    embedded = jnp.take(emb_table, x_ids.T, axis=0)        # (T, B, H)

    # Hoisted layer-0 input projection: one big matmul instead of T tiny ones.
    # gx0[t, g] = x_t @ W_ih0[g] + b0[g]   ->  (T, 4, B, H)
    gx0 = jnp.einsum("tbh,ghk->tgbk", embedded, w_ih0) + b0[None]

    # Pad batch to the sublane granule and time to the per-block step count.
    B_pad = max(8, _round_up(B, 8))
    Tt = min(T, 64)                                        # time steps per grid iteration
    T_pad = _round_up(T, Tt)
    gx0 = jnp.pad(gx0, ((0, T_pad - T), (0, 0), (0, B_pad - B), (0, 0)))

    const = lambda tb: (0, 0, 0)                           # resident weights, never re-indexed

    h1_seq = pl.pallas_call(
        _lstm_recurrence_kernel,
        out_shape=jax.ShapeDtypeStruct((T_pad, B_pad, H), jnp.float32),
        grid_spec=pltpu.PrefetchScalarGridSpec(
            num_scalar_prefetch=0,
            grid=(T_pad // Tt,),
            in_specs=[
                pl.BlockSpec((Tt, 4, B_pad, H), lambda tb: (tb, 0, 0, 0)),  # gx0 block
                pl.BlockSpec((4, H, H), const),                              # W_hh layer0
                pl.BlockSpec((4, H, H), const),                              # W_ih layer1
                pl.BlockSpec((4, H, H), const),                              # W_hh layer1
                pl.BlockSpec((4, 1, H), const),                              # b layer1
            ],
            out_specs=pl.BlockSpec((Tt, B_pad, H), lambda tb: (tb, 0, 0)),
            scratch_shapes=[pltpu.VMEM((B_pad, H), jnp.float32)] * 4,
        ),
        compiler_params=pltpu.CompilerParams(
            # Time-block axis carries the recurrence -> must run sequentially.
            dimension_semantics=("arbitrary",),
            # TODO(synk): for large H, set vmem_limit_bytes explicitly and/or
            # store weights in bf16 (re-budget for v7x's 64 MiB VMEM).
        ),
    )(gx0, w_hh0, w_ih1, w_hh1, b1)

    h1_seq = h1_seq[:T, :B]                                # drop time/batch padding

    # Hoisted final Linear: one batched lane-dense matmul, output directly (B, T, O).
    out = jnp.einsum("tbh,ho->bto", h1_seq, w_fc) + b_fc[0]
    return out


def reference_forward(x_ids, params):
    """Pure-JAX reference matching torch LSTM semantics (for validation)."""
    emb = jnp.take(params["embedding"], x_ids, axis=0)     # (B, T, H)
    B, T, H = emb.shape

    def run_layer(x_seq, w_ih, w_hh, b):
        def step(carry, x_t):
            h, c = carry
            pre = [x_t @ w_ih[g] + h @ w_hh[g] + b[g] for g in range(4)]
            i = jax.nn.sigmoid(pre[0])
            f = jax.nn.sigmoid(pre[1])
            g_ = jnp.tanh(pre[2])
            o = jax.nn.sigmoid(pre[3])
            c_new = f * c + i * g_
            h_new = o * jnp.tanh(c_new)
            return (h_new, c_new), h_new
        init = (jnp.zeros((B, H), jnp.float32), jnp.zeros((B, H), jnp.float32))
        _, hs = jax.lax.scan(step, init, jnp.transpose(x_seq, (1, 0, 2)))
        return jnp.transpose(hs, (1, 0, 2))                # (B, T, H)

    h1 = run_layer(emb, params["w_ih0"], params["w_hh0"], params["b0"])
    h2 = run_layer(h1, params["w_ih1"], params["w_hh1"], params["b1"])
    return h2 @ params["w_fc"] + params["b_fc"][0]


def init_params(key, vocab_size, hidden_size, output_size):
    H, O = hidden_size, output_size
    ks = jax.random.split(key, 10)
    scale = 1.0 / jnp.sqrt(H)
    u = lambda k, shape: jax.random.uniform(k, shape, jnp.float32, -scale, scale)
    return {
        "embedding": jax.random.normal(ks[0], (vocab_size, H), jnp.float32),
        # Per-gate layout (PyTorch order i, f, g, o), pre-transposed: x @ W[g].
        "w_ih0": u(ks[1], (4, H, H)),
        "w_hh0": u(ks[2], (4, H, H)),
        "b0":    u(ks[3], (4, 1, H)),     # b_ih + b_hh folded together
        "w_ih1": u(ks[4], (4, H, H)),
        "w_hh1": u(ks[5], (4, H, H)),
        "b1":    u(ks[6], (4, 1, H)),
        "w_fc":  u(ks[7], (H, O)),
        "b_fc":  u(ks[8], (1, O)),
    }


if __name__ == "__main__":
    VOCAB, HIDDEN, OUT = 16, 32, 8
    B, T = 2, 8

    key = jax.random.PRNGKey(0)
    k_param, k_ids = jax.random.split(key)
    params = init_params(k_param, VOCAB, HIDDEN, OUT)
    x_ids = jax.random.randint(k_ids, (B, T), 0, VOCAB, dtype=jnp.int32)

    out = lstm_model_forward(x_ids, params)
    out = jax.block_until_ready(out)

    ref = reference_forward(x_ids, params)
    assert out.shape == (B, T, OUT), out.shape
    assert jnp.allclose(out, ref, atol=1e-5, rtol=1e-5), "mismatch vs reference"

    print("KERNEL_OK")
</pallas_src>

<mosaic_0001>
module attributes {stable_mosaic.version = 11 : i64} {
  func.func @_lstm_recurrence_kernel(%arg0: i32, %arg1: memref<8x4x8x32xf32, #tpu.memory_space<vmem>>, %arg2: memref<4x32x32xf32, #tpu.memory_space<vmem>>, %arg3: memref<4x32x32xf32, #tpu.memory_space<vmem>>, %arg4: memref<4x32x32xf32, #tpu.memory_space<vmem>>, %arg5: memref<4x1x32xf32, #tpu.memory_space<vmem>>, %arg6: memref<8x8x32xf32, #tpu.memory_space<vmem>>, %arg7: memref<8x32xf32, #tpu.memory_space<vmem>>, %arg8: memref<8x32xf32, #tpu.memory_space<vmem>>, %arg9: memref<8x32xf32, #tpu.memory_space<vmem>>, %arg10: memref<8x32xf32, #tpu.memory_space<vmem>>) attributes {dimension_semantics = [#tpu.dimension_semantics<arbitrary>], iteration_bounds = array<i64: 1>, scalar_prefetch = 0 : i64, scratch_operands = 4 : i64, tpu.core_type = #tpu.core_type<tc>, window_params = [{transform_indices = @transform_0, window_bounds = array<i64: 8, 4, 8, 32>}, {pipeline_mode = #tpu.pipeline_mode<synchronous>, transform_indices = @transform_1, window_bounds = array<i64: 4, 32, 32>}, {pipeline_mode = #tpu.pipeline_mode<synchronous>, transform_indices = @transform_2, window_bounds = array<i64: 4, 32, 32>}, {pipeline_mode = #tpu.pipeline_mode<synchronous>, transform_indices = @transform_3, window_bounds = array<i64: 4, 32, 32>}, {pipeline_mode = #tpu.pipeline_mode<synchronous>, transform_indices = @transform_4, window_bounds = array<i64: 4, 1, 32>}, {transform_indices = @transform_5, window_bounds = array<i64: 8, 8, 32>}]} {
    %c0_i32 = arith.constant 0 : i32
    %0 = arith.cmpi eq, %arg0, %c0_i32 : i32
    %1 = arith.extui %0 : i1 to i32
    %c0_i32_0 = arith.constant 0 : i32
    %2 = arith.cmpi ne, %1, %c0_i32_0 : i32
    scf.if %2 {
      %cst = arith.constant 0.000000e+00 : f32
      %13 = vector.broadcast %cst : f32 to vector<8x32xf32>
      %c0_18 = arith.constant 0 : index
      %c0_19 = arith.constant 0 : index
      %14 = vector.load %arg7[%c0_18, %c0_19] : memref<8x32xf32, #tpu.memory_space<vmem>>, vector<8x32xf32>
      tpu.vector_store %arg7[%c0_18, %c0_19], %13 {strides = array<i32>} : memref<8x32xf32, #tpu.memory_space<vmem>>, vector<8x32xf32>,
      %cst_20 = arith.constant 0.000000e+00 : f32
      %15 = vector.broadcast %cst_20 : f32 to vector<8x32xf32>
      %c0_21 = arith.constant 0 : index
      %c0_22 = arith.constant 0 : index
      %16 = vector.load %arg8[%c0_21, %c0_22] : memref<8x32xf32, #tpu.memory_space<vmem>>, vector<8x32xf32>
      tpu.vector_store %arg8[%c0_21, %c0_22], %15 {strides = array<i32>} : memref<8x32xf32, #tpu.memory_space<vmem>>, vector<8x32xf32>,
      %cst_23 = arith.constant 0.000000e+00 : f32
      %17 = vector.broadcast %cst_23 : f32 to vector<8x32xf32>
      %c0_24 = arith.constant 0 : index
      %c0_25 = arith.constant 0 : index
      %18 = vector.load %arg9[%c0_24, %c0_25] : memref<8x32xf32, #tpu.memory_space<vmem>>, vector<8x32xf32>
      tpu.vector_store %arg9[%c0_24, %c0_25], %17 {strides = array<i32>} : memref<8x32xf32, #tpu.memory_space<vmem>>, vector<8x32xf32>,
      %cst_26 = arith.constant 0.000000e+00 : f32
      %19 = vector.broadcast %cst_26 : f32 to vector<8x32xf32>
      %c0_27 = arith.constant 0 : index
      %c0_28 = arith.constant 0 : index
      %20 = vector.load %arg10[%c0_27, %c0_28] : memref<8x32xf32, #tpu.memory_space<vmem>>, vector<8x32xf32>
      tpu.vector_store %arg10[%c0_27, %c0_28], %19 {strides = array<i32>} : memref<8x32xf32, #tpu.memory_space<vmem>>, vector<8x32xf32>,
    } else {
    }
    %c0 = arith.constant 0 : index
    %c0_1 = arith.constant 0 : index
    %3 = vector.load %arg7[%c0, %c0_1] : memref<8x32xf32, #tpu.memory_space<vmem>>, vector<8x32xf32>
    %c0_2 = arith.constant 0 : index
    %c0_3 = arith.constant 0 : index
    %4 = vector.load %arg8[%c0_2, %c0_3] : memref<8x32xf32, #tpu.memory_space<vmem>>, vector<8x32xf32>
    %c0_4 = arith.constant 0 : index
    %c0_5 = arith.constant 0 : index
    %5 = vector.load %arg9[%c0_4, %c0_5] : memref<8x32xf32, #tpu.memory_space<vmem>>, vector<8x32xf32>
    %c0_6 = arith.constant 0 : index
    %c0_7 = arith.constant 0 : index
    %6 = vector.load %arg10[%c0_6, %c0_7] : memref<8x32xf32, #tpu.memory_space<vmem>>, vector<8x32xf32>
    %c0_i32_8 = arith.constant 0 : i32
    %c8_i32 = arith.constant 8 : i32
    %7 = arith.addi %c0_i32_8, %c8_i32 : i32
    %c1_i32 = arith.constant 1 : i32
    %8:4 = scf.for %arg11 = %c0_i32_8 to %7 step %c1_i32 iter_args(%arg12 = %3, %arg13 = %4, %arg14 = %5, %arg15 = %6) -> (vector<8x32xf32>, vector<8x32xf32>, vector<8x32xf32>, vector<8x32xf32>)  : i32 {
      %13 = arith.index_cast %arg11 : i32 to index
      %c0_18 = arith.constant 0 : index
      %c0_19 = arith.constant 0 : index
      %c0_20 = arith.constant 0 : index
      %14 = vector.load %arg1[%13, %c0_18, %c0_19, %c0_20] : memref<8x4x8x32xf32, #tpu.memory_space<vmem>>, vector<1x4x8x32xf32>
      %15 = vector.shape_cast %14 : vector<1x4x8x32xf32> to vector<4x8x32xf32>
      %16 = vector.extract_strided_slice %15 {offsets = [0, 0, 0], sizes = [1, 8, 32], strides = [1, 1, 1]} : vector<4x8x32xf32> to vector<1x8x32xf32>
      %17 = vector.shape_cast %16 : vector<1x8x32xf32> to vector<8x32xf32>
      %c0_21 = arith.constant 0 : index
      %c0_22 = arith.constant 0 : index
      %c0_23 = arith.constant 0 : index
      %18 = vector.load %arg2[%c0_21, %c0_22, %c0_23] : memref<4x32x32xf32, #tpu.memory_space<vmem>>, vector<1x32x32xf32>
      %19 = vector.shape_cast %18 : vector<1x32x32xf32> to vector<32x32xf32>
      %cst = arith.constant dense<0.000000e+00> : vector<8x32xf32>
      %20 = tpu.matmul %arg12, %19, %cst {dimension_numbers = #tpu.dot_dimension_numbers<[1], [0], [0], [1], [0, 0, 1, 1], [], []>} : vector<8x32xf32>, vector<32x32xf32>, vector<8x32xf32> -> vector<8x32xf32>
      %21 = arith.addf %17, %20 : vector<8x32xf32>
      %22 = arith.negf %21 : vector<8x32xf32>
      %23 = math.exp %22 : vector<8x32xf32>
      %cst_24 = arith.constant 1.000000e+00 : f32
      %24 = vector.broadcast %cst_24 : f32 to vector<8x32xf32>
      %25 = arith.addf %24, %23 : vector<8x32xf32>
      %26 = arith.divf %24, %25 : vector<8x32xf32>
      %27 = vector.extract_strided_slice %15 {offsets = [1, 0, 0], sizes = [1, 8, 32], strides = [1, 1, 1]} : vector<4x8x32xf32> to vector<1x8x32xf32>
      %28 = vector.shape_cast %27 : vector<1x8x32xf32> to vector<8x32xf32>
      %c1 = arith.constant 1 : index
      %c0_25 = arith.constant 0 : index
      %c0_26 = arith.constant 0 : index
      %29 = vector.load %arg2[%c1, %c0_25, %c0_26] : memref<4x32x32xf32, #tpu.memory_space<vmem>>, vector<1x32x32xf32>
      %30 = vector.shape_cast %29 : vector<1x32x32xf32> to vector<32x32xf32>
      %cst_27 = arith.constant dense<0.000000e+00> : vector<8x32xf32>
      %31 = tpu.matmul %arg12, %30, %cst_27 {dimension_numbers = #tpu.dot_dimension_numbers<[1], [0], [0], [1], [0, 0, 1, 1], [], []>} : vector<8x32xf32>, vector<32x32xf32>, vector<8x32xf32> -> vector<8x32xf32>
      %32 = arith.addf %28, %31 : vector<8x32xf32>
      %33 = arith.negf %32 : vector<8x32xf32>
      %34 = math.exp %33 : vector<8x32xf32>
      %cst_28 = arith.constant 1.000000e+00 : f32
      %35 = vector.broadcast %cst_28 : f32 to vector<8x32xf32>
      %36 = arith.addf %35, %34 : vector<8x32xf32>
      %37 = arith.divf %35, %36 : vector<8x32xf32>
      %38 = vector.extract_strided_slice %15 {offsets = [2, 0, 0], sizes = [1, 8, 32], strides = [1, 1, 1]} : vector<4x8x32xf32> to vector<1x8x32xf32>
      %39 = vector.shape_cast %38 : vector<1x8x32xf32> to vector<8x32xf32>
      %c2 = arith.constant 2 : index
      %c0_29 = arith.constant 0 : index
      %c0_30 = arith.constant 0 : index
      %40 = vector.load %arg2[%c2, %c0_29, %c0_30] : memref<4x32x32xf32, #tpu.memory_space<vmem>>, vector<1x32x32xf32>
      %41 = vector.shape_cast %40 : vector<1x32x32xf32> to vector<32x32xf32>
      %cst_31 = arith.constant dense<0.000000e+00> : vector<8x32xf32>
      %42 = tpu.matmul %arg12, %41, %cst_31 {dimension_numbers = #tpu.dot_dimension_numbers<[1], [0], [0], [1], [0, 0, 1, 1], [], []>} : vector<8x32xf32>, vector<32x32xf32>, vector<8x32xf32> -> vector<8x32xf32>
      %43 = arith.addf %39, %42 : vector<8x32xf32>
      %44 = math.tanh %43 : vector<8x32xf32>
      %45 = vector.extract_strided_slice %15 {offsets = [3, 0, 0], sizes = [1, 8, 32], strides = [1, 1, 1]} : vector<4x8x32xf32> to vector<1x8x32xf32>
      %46 = vector.shape_cast %45 : vector<1x8x32xf32> to vector<8x32xf32>
      %c3 = arith.constant 3 : index
      %c0_32 = arith.constant 0 : index
      %c0_33 = arith.constant 0 : index
      %47 = vector.load %arg2[%c3, %c0_32, %c0_33] : memref<4x32x32xf32, #tpu.memory_space<vmem>>, vector<1x32x32xf32>
      %48 = vector.shape_cast %47 : vector<1x32x32xf32> to vector<32x32xf32>
      %cst_34 = arith.constant dense<0.000000e+00> : vector<8x32xf32>
      %49 = tpu.matmul %arg12, %48, %cst_34 {dimension_numbers = #tpu.dot_dimension_numbers<[1], [0], [0], [1], [0, 0, 1, 1], [], []>} : vector<8x32xf32>, vector<32x32xf32>, vector<8x32xf32> -> vector<8x32xf32>
      %50 = arith.addf %46, %49 : vector<8x32xf32>
      %51 = arith.negf %50 : vector<8x32xf32>
      %52 = math.exp %51 : vector<8x32xf32>
      %cst_35 = arith.constant 1.000000e+00 : f32
      %53 = vector.broadcast %cst_35 : f32 to vector<8x32xf32>
      %54 = arith.addf %53, %52 : vector<8x32xf32>
      %55 = arith.divf %53, %54 : vector<8x32xf32>
      %56 = arith.mulf %37, %arg13 : vector<8x32xf32>
      %57 = arith.mulf %26, %44 : vector<8x32xf32>
      %58 = arith.addf %56, %57 : vector<8x32xf32>
      %59 = math.tanh %58 : vector<8x32xf32>
      %60 = arith.mulf %55, %59 : vector<8x32xf32>
      %c0_36 = arith.constant 0 : index
      %c0_37 = arith.constant 0 : index
      %c0_38 = arith.constant 0 : index
      %61 = vector.load %arg3[%c0_36, %c0_37, %c0_38] : memref<4x32x32xf32, #tpu.memory_space<vmem>>, vector<1x32x32xf32>
      %62 = vector.shape_cast %61 : vector<1x32x32xf32> to vector<32x32xf32>
      %cst_39 = arith.constant dense<0.000000e+00> : vector<8x32xf32>
      %63 = tpu.matmul %60, %62, %cst_39 {dimension_numbers = #tpu.dot_dimension_numbers<[1], [0], [0], [1], [0, 0, 1, 1], [], []>} : vector<8x32xf32>, vector<32x32xf32>, vector<8x32xf32> -> vector<8x32xf32>
      %c0_40 = arith.constant 0 : index
      %c0_41 = arith.constant 0 : index
      %c0_42 = arith.constant 0 : index
      %64 = vector.load %arg4[%c0_40, %c0_41, %c0_42] : memref<4x32x32xf32, #tpu.memory_space<vmem>>, vector<1x32x32xf32>
      %65 = vector.shape_cast %64 : vector<1x32x32xf32> to vector<32x32xf32>
      %cst_43 = arith.constant dense<0.000000e+00> : vector<8x32xf32>
      %66 = tpu.matmul %arg14, %65, %cst_43 {dimension_numbers = #tpu.dot_dimension_numbers<[1], [0], [0], [1], [0, 0, 1, 1], [], []>} : vector<8x32xf32>, vector<32x32xf32>, vector<8x32xf32> -> vector<8x32xf32>
      %67 = arith.addf %63, %66 : vector<8x32xf32>
      %c0_44 = arith.constant 0 : index
      %c0_45 = arith.constant 0 : index
      %c0_46 = arith.constant 0 : index
      %68 = vector.load %arg5[%c0_44, %c0_45, %c0_46] : memref<4x1x32xf32, #tpu.memory_space<vmem>>, vector<1x1x32xf32>
      %69 = vector.shape_cast %68 : vector<1x1x32xf32> to vector<1x32xf32>
      %70 = vector.broadcast %69 : vector<1x32xf32> to vector<8x32xf32>
      %71 = arith.addf %67, %70 : vector<8x32xf32>
      %72 = arith.negf %71 : vector<8x32xf32>
      %73 = math.exp %72 : vector<8x32xf32>
      %cst_47 = arith.constant 1.000000e+00 : f32
      %74 = vector.broadcast %cst_47 : f32 to vector<8x32xf32>
      %75 = arith.addf %74, %73 : vector<8x32xf32>
      %76 = arith.divf %74, %75 : vector<8x32xf32>
      %c1_48 = arith.constant 1 : index
      %c0_49 = arith.constant 0 : index
      %c0_50 = arith.constant 0 : index
      %77 = vector.load %arg3[%c1_48, %c0_49, %c0_50] : memref<4x32x32xf32, #tpu.memory_space<vmem>>, vector<1x32x32xf32>
      %78 = vector.shape_cast %77 : vector<1x32x32xf32> to vector<32x32xf32>
      %cst_51 = arith.constant dense<0.000000e+00> : vector<8x32xf32>
      %79 = tpu.matmul %60, %78, %cst_51 {dimension_numbers = #tpu.dot_dimension_numbers<[1], [0], [0], [1], [0, 0, 1, 1], [], []>} : vector<8x32xf32>, vector<32x32xf32>, vector<8x32xf32> -> vector<8x32xf32>
      %c1_52 = arith.constant 1 : index
      %c0_53 = arith.constant 0 : index
      %c0_54 = arith.constant 0 : index
      %80 = vector.load %arg4[%c1_52, %c0_53, %c0_54] : memref<4x32x32xf32, #tpu.memory_space<vmem>>, vector<1x32x32xf32>
      %81 = vector.shape_cast %80 : vector<1x32x32xf32> to vector<32x32xf32>
      %cst_55 = arith.constant dense<0.000000e+00> : vector<8x32xf32>
      %82 = tpu.matmul %arg14, %81, %cst_55 {dimension_numbers = #tpu.dot_dimension_numbers<[1], [0], [0], [1], [0, 0, 1, 1], [], []>} : vector<8x32xf32>, vector<32x32xf32>, vector<8x32xf32> -> vector<8x32xf32>
      %83 = arith.addf %79, %82 : vector<8x32xf32>
      %c1_56 = arith.constant 1 : index
      %c0_57 = arith.constant 0 : index
      %c0_58 = arith.constant 0 : index
      %84 = vector.load %arg5[%c1_56, %c0_57, %c0_58] : memref<4x1x32xf32, #tpu.memory_space<vmem>>, vector<1x1x32xf32>
      %85 = vector.shape_cast %84 : vector<1x1x32xf32> to vector<1x32xf32>
      %86 = vector.broadcast %85 : vector<1x32xf32> to vector<8x32xf32>
      %87 = arith.addf %83, %86 : vector<8x32xf32>
      %88 = arith.negf %87 : vector<8x32xf32>
      %89 = math.exp %88 : vector<8x32xf32>
      %cst_59 = arith.constant 1.000000e+00 : f32
      %90 = vector.broadcast %cst_59 : f32 to vector<8x32xf32>
      %91 = arith.addf %90, %89 : vector<8x32xf32>
      %92 = arith.divf %90, %91 : vector<8x32xf32>
      %c2_60 = arith.constant 2 : index
      %c0_61 = arith.constant 0 : index
      %c0_62 = arith.constant 0 : index
      %93 = vector.load %arg3[%c2_60, %c0_61, %c0_62] : memref<4x32x32xf32, #tpu.memory_space<vmem>>, vector<1x32x32xf32>
      %94 = vector.shape_cast %93 : vector<1x32x32xf32> to vector<32x32xf32>
      %cst_63 = arith.constant dense<0.000000e+00> : vector<8x32xf32>
      %95 = tpu.matmul %60, %94, %cst_63 {dimension_numbers = #tpu.dot_dimension_numbers<[1], [0], [0], [1], [0, 0, 1, 1], [], []>} : vector<8x32xf32>, vector<32x32xf32>, vector<8x32xf32> -> vector<8x32xf32>
      %c2_64 = arith.constant 2 : index
      %c0_65 = arith.constant 0 : index
      %c0_66 = arith.constant 0 : index
      %96 = vector.load %arg4[%c2_64, %c0_65, %c0_66] : memref<4x32x32xf32, #tpu.memory_space<vmem>>, vector<1x32x32xf32>
      %97 = vector.shape_cast %96 : vector<1x32x32xf32> to vector<32x32xf32>
      %cst_67 = arith.constant dense<0.000000e+00> : vector<8x32xf32>
      %98 = tpu.matmul %arg14, %97, %cst_67 {dimension_numbers = #tpu.dot_dimension_numbers<[1], [0], [0], [1], [0, 0, 1, 1], [], []>} : vector<8x32xf32>, vector<32x32xf32>, vector<8x32xf32> -> vector<8x32xf32>
      %99 = arith.addf %95, %98 : vector<8x32xf32>
      %c2_68 = arith.constant 2 : index
      %c0_69 = arith.constant 0 : index
      %c0_70 = arith.constant 0 : index
      %100 = vector.load %arg5[%c2_68, %c0_69, %c0_70] : memref<4x1x32xf32, #tpu.memory_space<vmem>>, vector<1x1x32xf32>
      %101 = vector.shape_cast %100 : vector<1x1x32xf32> to vector<1x32xf32>
      %102 = vector.broadcast %101 : vector<1x32xf32> to vector<8x32xf32>
      %103 = arith.addf %99, %102 : vector<8x32xf32>
      %104 = math.tanh %103 : vector<8x32xf32>
      %c3_71 = arith.constant 3 : index
      %c0_72 = arith.constant 0 : index
      %c0_73 = arith.constant 0 : index
      %105 = vector.load %arg3[%c3_71, %c0_72, %c0_73] : memref<4x32x32xf32, #tpu.memory_space<vmem>>, vector<1x32x32xf32>
      %106 = vector.shape_cast %105 : vector<1x32x32xf32> to vector<32x32xf32>
      %cst_74 = arith.constant dense<0.000000e+00> : vector<8x32xf32>
      %107 = tpu.matmul %60, %106, %cst_74 {dimension_numbers = #tpu.dot_dimension_numbers<[1], [0], [0], [1], [0, 0, 1, 1], [], []>} : vector<8x32xf32>, vector<32x32xf32>, vector<8x32xf32> -> vector<8x32xf32>
      %c3_75 = arith.constant 3 : index
      %c0_76 = arith.constant 0 : index
      %c0_77 = arith.constant 0 : index
      %108 = vector.load %arg4[%c3_75, %c0_76, %c0_77] : memref<4x32x32xf32, #tpu.memory_space<vmem>>, vector<1x32x32xf32>
      %109 = vector.shape_cast %108 : vector<1x32x32xf32> to vector<32x32xf32>
      %cst_78 = arith.constant dense<0.000000e+00> : vector<8x32xf32>
      %110 = tpu.matmul %arg14, %109, %cst_78 {dimension_numbers = #tpu.dot_dimension_numbers<[1], [0], [0], [1], [0, 0, 1, 1], [], []>} : vector<8x32xf32>, vector<32x32xf32>, vector<8x32xf32> -> vector<8x32xf32>
      %111 = arith.addf %107, %110 : vector<8x32xf32>
      %c3_79 = arith.constant 3 : index
      %c0_80 = arith.constant 0 : index
      %c0_81 = arith.constant 0 : index
      %112 = vector.load %arg5[%c3_79, %c0_80, %c0_81] : memref<4x1x32xf32, #tpu.memory_space<vmem>>, vector<1x1x32xf32>
      %113 = vector.shape_cast %112 : vector<1x1x32xf32> to vector<1x32xf32>
      %114 = vector.broadcast %113 : vector<1x32xf32> to vector<8x32xf32>
      %115 = arith.addf %111, %114 : vector<8x32xf32>
      %116 = arith.negf %115 : vector<8x32xf32>
      %117 = math.exp %116 : vector<8x32xf32>
      %cst_82 = arith.constant 1.000000e+00 : f32
      %118 = vector.broadcast %cst_82 : f32 to vector<8x32xf32>
      %119 = arith.addf %118, %117 : vector<8x32xf32>
      %120 = arith.divf %118, %119 : vector<8x32xf32>
      %121 = arith.mulf %92, %arg15 : vector<8x32xf32>
      %122 = arith.mulf %76, %104 : vector<8x32xf32>
      %123 = arith.addf %121, %122 : vector<8x32xf32>
      %124 = math.tanh %123 : vector<8x32xf32>
      %125 = arith.mulf %120, %124 : vector<8x32xf32>
      %126 = arith.index_cast %arg11 : i32 to index
      %c0_83 = arith.constant 0 : index
      %c0_84 = arith.constant 0 : index
      %127 = vector.load %arg6[%126, %c0_83, %c0_84] : memref<8x8x32xf32, #tpu.memory_space<vmem>>, vector<1x8x32xf32>
      %128 = vector.shape_cast %127 : vector<1x8x32xf32> to vector<8x32xf32>
      %129 = vector.shape_cast %125 : vector<8x32xf32> to vector<1x8x32xf32>
      tpu.vector_store %arg6[%126, %c0_83, %c0_84], %129 {strides = array<i32>} : memref<8x8x32xf32, #tpu.memory_space<vmem>>, vector<1x8x32xf32>,
      scf.yield %60, %58, %125, %123 : vector<8x32xf32>, vector<8x32xf32>, vector<8x32xf32>, vector<8x32xf32>
    }
    %c8_i32_9 = arith.constant 8 : i32
    %c0_10 = arith.constant 0 : index
    %c0_11 = arith.constant 0 : index
    %9 = vector.load %arg7[%c0_10, %c0_11] : memref<8x32xf32, #tpu.memory_space<vmem>>, vector<8x32xf32>
    tpu.vector_store %arg7[%c0_10, %c0_11], %8#0 {strides = array<i32>} : memref<8x32xf32, #tpu.memory_space<vmem>>, vector<8x32xf32>,
    %c0_12 = arith.constant 0 : index
    %c0_13 = arith.constant 0 : index
    %10 = vector.load %arg8[%c0_12, %c0_13] : memref<8x32xf32, #tpu.memory_space<vmem>>, vector<8x32xf32>
    tpu.vector_store %arg8[%c0_12, %c0_13], %8#1 {strides = array<i32>} : memref<8x32xf32, #tpu.memory_space<vmem>>, vector<8x32xf32>,
    %c0_14 = arith.constant 0 : index
    %c0_15 = arith.constant 0 : index
    %11 = vector.load %arg9[%c0_14, %c0_15] : memref<8x32xf32, #tpu.memory_space<vmem>>, vector<8x32xf32>
    tpu.vector_store %arg9[%c0_14, %c0_15], %8#2 {strides = array<i32>} : memref<8x32xf32, #tpu.memory_space<vmem>>, vector<8x32xf32>,
    %c0_16 = arith.constant 0 : index
    %c0_17 = arith.constant 0 : index
    %12 = vector.load %arg10[%c0_16, %c0_17] : memref<8x32xf32, #tpu.memory_space<vmem>>, vector<8x32xf32>
    tpu.vector_store %arg10[%c0_16, %c0_17], %8#3 {strides = array<i32>} : memref<8x32xf32, #tpu.memory_space<vmem>>, vector<8x32xf32>,
    return
  }
  func.func @transform_0(%arg0: i32) -> (i32, i32, i32, i32) {
    %c0_i32 = arith.constant 0 : i32
    %c0_i32_0 = arith.constant 0 : i32
    %c0_i32_1 = arith.constant 0 : i32
    %c0_i32_2 = arith.constant 0 : i32
    return %arg0, %c0_i32, %c0_i32_0, %c0_i32_1 : i32, i32, i32, i32
  }
  func.func @transform_1(%arg0: i32) -> (i32, i32, i32) {
    %c0_i32 = arith.constant 0 : i32
    %c0_i32_0 = arith.constant 0 : i32
    %c0_i32_1 = arith.constant 0 : i32
    %c0_i32_2 = arith.constant 0 : i32
    return %c0_i32, %c0_i32_0, %c0_i32_1 : i32, i32, i32
  }
  func.func @transform_2(%arg0: i32) -> (i32, i32, i32) {
    %c0_i32 = arith.constant 0 : i32
    %c0_i32_0 = arith.constant 0 : i32
    %c0_i32_1 = arith.constant 0 : i32
    %c0_i32_2 = arith.constant 0 : i32
    return %c0_i32, %c0_i32_0, %c0_i32_1 : i32, i32, i32
  }
  func.func @transform_3(%arg0: i32) -> (i32, i32, i32) {
    %c0_i32 = arith.constant 0 : i32
    %c0_i32_0 = arith.constant 0 : i32
    %c0_i32_1 = arith.constant 0 : i32
    %c0_i32_2 = arith.constant 0 : i32
    return %c0_i32, %c0_i32_0, %c0_i32_1 : i32, i32, i32
  }
  func.func @transform_4(%arg0: i32) -> (i32, i32, i32) {
    %c0_i32 = arith.constant 0 : i32
    %c0_i32_0 = arith.constant 0 : i32
    %c0_i32_1 = arith.constant 0 : i32
    %c0_i32_2 = arith.constant 0 : i32
    return %c0_i32, %c0_i32_0, %c0_i32_1 : i32, i32, i32
  }
  func.func @transform_5(%arg0: i32) -> (i32, i32, i32) {
    %c0_i32 = arith.constant 0 : i32
    %c0_i32_0 = arith.constant 0 : i32
    %c0_i32_1 = arith.constant 0 : i32
    return %arg0, %c0_i32, %c0_i32_0 : i32, i32, i32
  }
}

</mosaic_0001>

<bundles_post_ra>
// kernel: lstm_model_forward.1
= control target key start
LH: loop header
LB: loop body
LE: loop exit
PB: predicated region body
PF: predicated region fallthrough
CT: control target
= control target key end

     0   :  { %vm24_vm0 = vcmask 261120   ;;  %v1519_v0 = vmov 0.0   ;;  %s1565_s18 = smov 0   ;;  %s1839_s0 = inlined_call_operand.vmem [shape: f32[8,4,8,32], index: 0, kind: input, shape index: {}]   ;;  %s1840_s1 = inlined_call_operand.vmem [shape: f32[4,32,32], index: 1, kind: input, shape index: {}]   ;;  %s1841_s2 = inlined_call_operand.vmem [shape: f32[4,32,32], index: 2, kind: input, shape index: {}]   ;;  %s1842_s3 = inlined_call_operand.vmem [shape: f32[4,32,32], index: 3, kind: input, shape index: {}]   ;;  %s1843_s4 = inlined_call_operand.vmem [shape: f32[4,1,32], index: 4, kind: input, shape index: {}]   ;;  %s1844_s5 = inlined_call_operand.vmem [shape: f32[8,8,32], index: 5, kind: output, shape index: {}]  }
   0x1   :  { %25 = vst.msk [vmem:[#allocation2] sm:$0xff] %vm24_vm0, %v1519_v0  ;;  %26 = vst.msk [vmem:[#allocation3] sm:$0xff] %vm24_vm0, %v1519_v0 }
   0x2   :  { %27 = vst.msk [vmem:[#allocation4] sm:$0xff] %vm24_vm0, %v1519_v0  ;;  %28 = vst.msk [vmem:[#allocation5] sm:$0xff] %vm24_vm0, %v1519_v0 }
   0x8   :  { %v29_v1 = vld [vmem:[#allocation2] sm:$0xff]   ;;  %v30_v2 = vld [vmem:[#allocation3] sm:$0xff]  }
   0x9   :  { %v31_v3 = vld [vmem:[#allocation4] sm:$0xff]   ;;  %v32_v4 = vld [vmem:[#allocation5] sm:$0xff]  }
   0xa LB: > { %v49_v5 = vld [vmem:[%s1840_s1] sm:$0xff]  ;;  %v50_v6 = vld [vmem:[%s1840_s1 + $0x8] sm:$0xff]  ;;  %v1520_v8 = vmov 0.0|0.0   ;;  %v51_v11 = vld [vmem:[%s1840_s1 + $0x10] sm:$0xff]  ;;  %vm1521_vm1 = vmmov 0   ;;  %v1522_v16 = vmov 0.0   ;;  %s1517_s18 = sphi %s1565_s18, %s38_s18   ;;  %v1513_v1 = vphi %v29_v1, %v1850_v1   ;;  %v1509_v2 = vphi %v30_v2, %v1849_v2   ;;  %v1505_v3 = vphi %v31_v3, %v1848_v3   ;;  %v1501_v4 = vphi %v32_v4, %v1847_v4  }
   0xb   : > { %v1079_v7 = vld [vmem:[%s1840_s1 + $0x20] sm:$0xff]  ;;  %1331 = vmatprep.subr.bf16.mxu0 %v1520_v8  ;;  %1337 = vmatprep.subr.bf16.mxu1 %v1520_v8  ;;  %v1332_v9 = vpack.c.bf16 %v50_v6, %v49_v5  ;;  %v1080_v10 = vld [vmem:[%s1840_s1 + $0x28] sm:$0xff]  ;;  %v52_v12 = vld [vmem:[%s1840_s1 + $0x18] sm:$0xff]  ;;  %s1076_s19 = sshll.u32 %s1517_s18, 5  ;;  %s1138_s6 = sshll.u32 %s1517_s18, 3 }
   0xc   : > { %v1338_v13 = vpack.c.bf16 %v1080_v10, %v1079_v7  ;;  %v1081_v14 = vld [vmem:[%s1840_s1 + $0x30] sm:$0xff]  ;;  %v1082_v15 = vld [vmem:[%s1840_s1 + $0x38] sm:$0xff]  ;;  %1207 = vmatprep.mubr.msk.f32.mxu0 %vm1521_vm1, %v1522_v16  ;;  %1218 = vmatprep.mubr.msk.f32.mxu1 %vm1521_vm1, %v1522_v16  ;;  %v1335_v17 = vpack.c.bf16 %v52_v12, %v51_v11  ;;  %v1085_v19 = vld [vmem:[%s1840_s1 + $0x40] sm:$0xff]  ;;  %s44_s22 = scalar_lea.vmem %s1839_s0, %s1076_s19  ;;  %s1044_s9 = scalar_lea.vmem %s1844_s5, %s1138_s6 }
   0xd   : > { %1333 = vmatpush3.bf16.msra.mxu0 %v1332_v9  ;;  %v1341_v18 = vpack.c.bf16 %v1082_v15, %v1081_v14  ;;  %v1086_v20 = vld [vmem:[%s1840_s1 + $0x48] sm:$0xff]  ;;  %v1090_v21 = vld [vmem:[%s1840_s1 + $0x60] sm:$0xff]  ;;  %v1087_v25 = vld [vmem:[%s1840_s1 + $0x50] sm:$0xff]  ;;  %s38_s18 = sadd.s32 1, %s1517_s18  }
   0xe   : > { %1339 = vmatpush3.bf16.msra.mxu1 %v1338_v13  ;;  %1334 = vmatprep.subr.bf16.mxu0 %v1520_v8  ;;  %v1091_v22 = vld [vmem:[%s1840_s1 + $0x68] sm:$0xff]  ;;  %v1344_v23 = vpack.c.bf16 %v1086_v20, %v1085_v19  ;;  %v1088_v26 = vld [vmem:[%s1840_s1 + $0x58] sm:$0xff]  ;;  %v1092_v27 = vld [vmem:[%s1840_s1 + $0x70] sm:$0xff]  ;;  %p35_p0 = scmp.ge.s32.totalorder %s38_s18, 8  }
   0xf   : > { %1340 = vmatprep.subr.bf16.mxu1 %v1520_v8  ;;  %v1350_v24 = vpack.c.bf16 %v1091_v22, %v1090_v21  ;;  %v1093_v28 = vld [vmem:[%s1840_s1 + $0x78] sm:$0xff]  ;;  %v1347_v29 = vpack.c.bf16 %v1088_v26, %v1087_v25  ;;  %v384_v31 = vld [vmem:[%s1842_s3] sm:$0xff]  ;;  %v385_v32 = vld [vmem:[%s1842_s3 + $0x8] sm:$0xff] }
  0x10   : > { %v1353_v30 = vpack.c.bf16 %v1093_v28, %v1092_v27  ;;  %v380_v33 = vld [vmem:[%s1841_s2] sm:$0xff]  ;;  %v1356_v34 = vpack.c.bf16 %v385_v32, %v384_v31  ;;  %v381_v35 = vld [vmem:[%s1841_s2 + $0x8] sm:$0xff]  ;;  %v386_v36 = vld [vmem:[%s1842_s3 + $0x10] sm:$0xff] }
  0x11   : > { %1336 = vmatpush3.bf16.msra.mxu0 %v1335_v17  ;;  %v387_v37 = vld [vmem:[%s1842_s3 + $0x18] sm:$0xff]  ;;  %v1362_v38 = vpack.c.bf16 %v381_v35, %v380_v33  ;;  %v382_v39 = vld [vmem:[%s1841_s2 + $0x10] sm:$0xff]  ;;  %v1104_v43 = vld [vmem:[%s1842_s3 + $0x20] sm:$0xff] }
  0x12   : > { %1342 = vmatpush3.bf16.msra.mxu1 %v1341_v18  ;;  %1343 = vmatprep.subr.bf16.mxu0 %v1520_v8  ;;  %v383_v40 = vld [vmem:[%s1841_s2 + $0x18] sm:$0xff]  ;;  %v1359_v41 = vpack.c.bf16 %v387_v37, %v386_v36  ;;  %v1105_v44 = vld [vmem:[%s1842_s3 + $0x28] sm:$0xff]  ;;  %v1106_v46 = vld [vmem:[%s1842_s3 + $0x30] sm:$0xff] }
  0x13   : > { %1349 = vmatprep.subr.bf16.mxu1 %v1520_v8  ;;  %v1365_v42 = vpack.c.bf16 %v383_v40, %v382_v39  ;;  %v1368_v45 = vpack.c.bf16 %v1105_v44, %v1104_v43  ;;  %v1107_v47 = vld [vmem:[%s1842_s3 + $0x38] sm:$0xff]  ;;  %v1117_v49 = vld [vmem:[%s1842_s3 + $0x40] sm:$0xff]  ;;  %v1118_v50 = vld [vmem:[%s1842_s3 + $0x48] sm:$0xff] }
  0x14   : > { %1208 = vmatmul.mubr.msk.f32.vlgmr.msra.gmra.mrb[0].mxu0 %vm24_vm0, %v1513_v1  ;;  %v1371_v48 = vpack.c.bf16 %v1107_v47, %v1106_v46  ;;  %v1380_v51 = vpack.c.bf16 %v1118_v50, %v1117_v49  ;;  %v1119_v52 = vld [vmem:[%s1842_s3 + $0x50] sm:$0xff]  ;;  %v1120_v53 = vld [vmem:[%s1842_s3 + $0x58] sm:$0xff]  ;;  %v1129_v55 = vld [vmem:[%s1842_s3 + $0x60] sm:$0xff] }
  0x15   : > { %1219 = vmatmul.mubr.msk.f32.vlgmr.msra.gmra.mrb[0].mxu1 %vm24_vm0, %v1513_v1  ;;  %1345 = vmatpush3.bf16.msra.mxu0 %v1344_v23  ;;  %v1383_v54 = vpack.c.bf16 %v1120_v53, %v1119_v52  ;;  %v1130_v56 = vld [vmem:[%s1842_s3 + $0x68] sm:$0xff]  ;;  %v1131_v58 = vld [vmem:[%s1842_s3 + $0x70] sm:$0xff]  ;;  %v1132_v59 = vld [vmem:[%s1842_s3 + $0x78] sm:$0xff] }
  0x16   : > { %1351 = vmatpush3.bf16.msra.mxu1 %v1350_v24  ;;  %1346 = vmatprep.subr.bf16.mxu0 %v1520_v8  ;;  %v1392_v57 = vpack.c.bf16 %v1130_v56, %v1129_v55  ;;  %v1395_v60 = vpack.c.bf16 %v1132_v59, %v1131_v58  ;;  %v45_v61 = vld [vmem:[%s44_s22] sm:$0xff]  ;;  %v46_v62 = vld [vmem:[%s44_s22 + $0x8] sm:$0xff]  ;;  %v48_v11 = vld [vmem:[%s44_s22 + $0x18] sm:$0xff] }
  0x17   : > { %1352 = vmatprep.subr.bf16.mxu1 %v1520_v8  ;;  %1229 = vmatprep.mubr.msk.f32.mxu0 %vm1521_vm1, %v1522_v16  ;;  %v1100_v32 = vld [vmem:[%s1841_s2 + $0x20] sm:$0xff]  ;;  %v1101_v33 = vld [vmem:[%s1841_s2 + $0x28] sm:$0xff]  ;;  %v1115_v43 = vld [vmem:[%s1841_s2 + $0x50] sm:$0xff] }
  0x18   : > { %1240 = vmatprep.mubr.msk.f32.mxu1 %vm1521_vm1, %v1522_v16  ;;  %v1374_v36 = vpack.c.bf16 %v1101_v33, %v1100_v32  ;;  %v1113_v40 = vld [vmem:[%s1841_s2 + $0x40] sm:$0xff]  ;;  %v1116_v44 = vld [vmem:[%s1841_s2 + $0x58] sm:$0xff]  ;;  %v1126_v47 = vld [vmem:[%s1841_s2 + $0x68] sm:$0xff] }
  0x19   : > { %1348 = vmatpush3.bf16.msra.mxu0 %v1347_v29  ;;  %v1125_v46 = vld [vmem:[%s1841_s2 + $0x60] sm:$0xff]  ;;  %v1127_v49 = vld [vmem:[%s1841_s2 + $0x70] sm:$0xff]  ;;  %v1128_v50 = vld [vmem:[%s1841_s2 + $0x78] sm:$0xff] }
  0x1a   : > { %1354 = vmatpush3.bf16.msra.mxu1 %v1353_v30  ;;  %1355 = vmatprep.subr.bf16.mxu0 %v1520_v8 }
  0x1b   : > { %1361 = vmatprep.subr.bf16.mxu1 %v1520_v8 }
  0x1c   : > { %1230 = vmatmul.mubr.msk.f32.vlgmr.msra.gmra.mrb[2].mxu0 %vm24_vm0, %v1513_v1 }
  0x1d   : > { %1241 = vmatmul.mubr.msk.f32.vlgmr.msra.gmra.mrb[2].mxu1 %vm24_vm0, %v1513_v1  ;;  %1251 = vmatprep.mubr.msk.f32.mxu0 %vm1521_vm1, %v1522_v16 }
  0x1e   : > { %1262 = vmatprep.mubr.msk.f32.mxu1 %vm1521_vm1, %v1522_v16  ;;  %1357 = vmatpush3.bf16.msra.mxu0 %v1356_v34 }
  0x1f   : > { %1363 = vmatpush3.bf16.msra.mxu1 %v1362_v38  ;;  %1358 = vmatprep.subr.bf16.mxu0 %v1520_v8  ;;  %v1103_v38 = vld [vmem:[%s1841_s2 + $0x38] sm:$0xff] }
  0x20   : > { %1364 = vmatprep.subr.bf16.mxu1 %v1520_v8 }
  0x22   : > { %1360 = vmatpush3.bf16.msra.mxu0 %v1359_v41  ;;  %v1114_v41 = vld [vmem:[%s1841_s2 + $0x48] sm:$0xff] }
  0x23   : > { %1366 = vmatpush3.bf16.msra.mxu1 %v1365_v42  ;;  %1367 = vmatprep.subr.bf16.mxu0 %v1520_v8  ;;  %v1386_v42 = vpack.c.bf16 %v1114_v41, %v1113_v40 }
  0x24   : > { %1373 = vmatprep.subr.bf16.mxu1 %v1520_v8 }
  0x25   : > { %1252 = vmatmul.mubr.msk.f32.vlgmr.msra.gmra.mrb[4].mxu0 %vm24_vm0, %v1505_v3 }
  0x26   : > { %1369 = vmatpush3.bf16.msra.mxu0 %v1368_v45  ;;  %1273 = vmatprep.mubr.msk.f32.mxu0 %vm1521_vm1, %v1522_v16  ;;  %v1389_v45 = vpack.c.bf16 %v1116_v44, %v1115_v43 }
  0x27   : > { %1370 = vmatprep.subr.bf16.mxu0 %v1520_v8 }
  0x2a   : > { %1372 = vmatpush3.bf16.msra.mxu0 %v1371_v48  ;;  %v1398_v48 = vpack.c.bf16 %v1126_v47, %v1125_v46 }
  0x2b   : > { %1379 = vmatprep.subr.bf16.mxu0 %v1520_v8 }
  0x2d   : > { %1274 = vmatmul.mubr.msk.f32.vlgmr.msra.gmra.mrb[6].mxu0 %vm24_vm0, %v1505_v3 }
  0x2e   : > { %1381 = vmatpush3.bf16.msra.mxu0 %v1380_v51  ;;  %1295 = vmatprep.mubr.msk.f32.mxu0 %vm1521_vm1, %v1522_v16  ;;  %v1401_v51 = vpack.c.bf16 %v1128_v50, %v1127_v49 }
  0x2f   : > { %1382 = vmatprep.subr.bf16.mxu0 %v1520_v8 }
  0x32   : > { %1384 = vmatpush3.bf16.msra.mxu0 %v1383_v54 }
  0x33   : > { %1391 = vmatprep.subr.bf16.mxu0 %v1520_v8 }
  0x35   : > { %1296 = vmatmul.mubr.msk.f32.vlgmr.msra.gmra.mrb[8].mxu0 %vm24_vm0, %v1505_v3 }
  0x36   : > { %1393 = vmatpush3.bf16.msra.mxu0 %v1392_v57  ;;  %1317 = vmatprep.mubr.msk.f32.mxu0 %vm1521_vm1, %v1522_v16 }
  0x37   : > { %1394 = vmatprep.subr.bf16.mxu0 %v1520_v8 }
  0x3a   : > { %1396 = vmatpush3.bf16.msra.mxu0 %v1395_v60 }
  0x3d   : > { %1318 = vmatmul.mubr.msk.f32.vlgmr.msra.gmra.mrb[10].mxu0 %vm24_vm0, %v1505_v3  ;;  %v47_v3 = vld [vmem:[%s44_s22 + $0x10] sm:$0xff] }
  0xe7   : > { %v123_v63 = vpop.f32.mrb[0].mxu0 }
  0xe8   : > { %v127_v0 = vadd.f32 %v123_v63, %v45_v61  ;;  %v205_v1 = vpop.f32.mrb[0].mxu1  ;;  %v1209_v5 = vpop.f32.mrb[1].mxu0  ;;  %v1098_v61 = vld [vmem:[%s1843_s4] ss:$0 sm:$0xff] }
  0xe9   : > { %v209_v6 = vadd.f32 %v205_v1, %v46_v62  ;;  %v1220_v7 = vpop.f32.mrb[1].mxu1 }
  0xea   : > { %v1078_v9 = vmul.f32 -1.442695, %v127_v0 }
  0xeb   : > { %v1084_v10 = vmul.f32 -1.442695, %v209_v6 }
  0xec   : > { %1447 = vpow2.f32 %v1078_v9 }
  0xed   : > { %1449 = vpow2.f32 %v1084_v10 }
  0xef   : > { %v287_v12 = vpop.f32.mrb[2].mxu0 }
  0xf0   : > { %v364_v13 = vpop.f32.mrb[2].mxu1  ;;  %v1231_v14 = vpop.f32.mrb[3].mxu0  ;;  %v291_v18 = vadd.f32 %v287_v12, %v47_v3 }
  0xf1   : > { %v368_v15 = vadd.f32 %v364_v13, %v48_v11  ;;  %v1242_v17 = vpop.f32.mrb[3].mxu1  ;;  %v1124_v11 = vld [vmem:[%s1843_s4 + $0x2] ss:$0 sm:$0xff] }
  0xf3   : > { %v1095_v19 = vmul.f32 -1.442695, %v368_v15 }
  0xf5   : > { %1451 = vpow2.f32 %v1095_v19 }
  0xf6   : > { %v1448_v20 = vpop.eup %1447  ;;  %1453 = vtanh.f32 %v291_v18  ;;  %v1136_v18 = vld [vmem:[%s1843_s4 + $0x3] ss:$0 sm:$0xff] }
  0xf7   : > { %v1450_v21 = vpop.eup %1449  ;;  %v131_v22 = vadd.f32 1.0, %v1448_v20 }
  0xf8   : > { %v213_v23 = vadd.f32 1.0, %v1450_v21  ;;  %v457_v52 = vpop.f32.mrb[4].mxu0 }
  0xf9   : > { %1455 = vrcp.f32 %v131_v22  ;;  %v1253_v53 = vpop.f32.mrb[5].mxu0 }
  0xfa   : > { %1457 = vrcp.f32 %v213_v23 }
  0xff   : > { %v1452_v24 = vpop.eup %1451 }
 0x100   : > { %v1454_v25 = vpop.eup %1453  ;;  %v372_v27 = vadd.f32 1.0, %v1452_v24  ;;  %v624_v54 = vpop.f32.mrb[6].mxu0 }
 0x101   : > { %v1275_v55 = vpop.f32.mrb[7].mxu0 }
 0x102   : > { %1459 = vrcp.f32 %v372_v27 }
 0x103   : > { %v1456_v26 = vpop.eup %1455 }
 0x104   : > { %v1458_v28 = vpop.eup %1457  ;;  %v376_v29 = vmul.f32 %v1456_v26, %v1454_v25 }
 0x105   : > { %v375_v30 = vmul.f32 %v1509_v2, %v1458_v28 }
 0x107   : > { %v1742_v2 = vadd.f32 %v376_v29, %v375_v30  }
 0x108   : > { %v789_v56 = vpop.f32.mrb[8].mxu0 }
 0x109   : > { %v1845_v31 = vmov %v1742_v2  ;;  %v1102_v2 = vld [vmem:[%s1841_s2 + $0x30] sm:$0xff]  ;;  %v1297_v57 = vpop.f32.mrb[9].mxu0 }
 0x10a   : > { %1461 = vtanh.f32 %v1845_v31  ;;  %v1377_v39 = vpack.c.bf16 %v1103_v38, %v1102_v2  ;;  %v1849_v2 = vmov %v1845_v31  ;;  %1048 = vst.msk [vmem:[#allocation3] sm:$0xff] (%p35_p0), %vm24_vm0, %v1845_v31 }
 0x10c   : > { %v1460_v34 = vpop.eup %1459 }
 0x110   : > { %v949_v58 = vpop.f32.mrb[10].mxu0 }
 0x111   : > { %v1319_v59 = vpop.f32.mrb[11].mxu0 }
 0x114   : > { %v1462_v35 = vpop.eup %1461 }
 0x115   : > { %v1751_v1 = vmul.f32 %v1462_v35, %v1460_v34  }
 0x117   : > { %v1846_v37 = vmov %v1751_v1  ;;  %v1111_v1 = vld [vmem:[%s1843_s4 + $0x1] ss:$0 sm:$0xff] }
 0x118   : > { %1263 = vmatmul.mubr.msk.f32.vlgmr.msra.gmra.mrb[4].mxu1 %vm24_vm0, %v1846_v37  ;;  %1047 = vst.msk [vmem:[#allocation2] sm:$0xff] (%p35_p0), %vm24_vm0, %v1846_v37 }
 0x119   : > { %1375 = vmatpush3.bf16.msra.mxu1 %v1374_v36  ;;  %1284 = vmatprep.mubr.msk.f32.mxu1 %vm1521_vm1, %v1522_v16 }
 0x11a   : > { %1376 = vmatprep.subr.bf16.mxu1 %v1520_v8 }
 0x11d   : > { %1378 = vmatpush3.bf16.msra.mxu1 %v1377_v39 }
 0x11e   : > { %1385 = vmatprep.subr.bf16.mxu1 %v1520_v8 }
 0x120   : > { %1285 = vmatmul.mubr.msk.f32.vlgmr.msra.gmra.mrb[6].mxu1 %vm24_vm0, %v1846_v37 }
 0x121   : > { %1387 = vmatpush3.bf16.msra.mxu1 %v1386_v42  ;;  %1306 = vmatprep.mubr.msk.f32.mxu1 %vm1521_vm1, %v1522_v16 }
 0x122   : > { %1388 = vmatprep.subr.bf16.mxu1 %v1520_v8 }
 0x125   : > { %1390 = vmatpush3.bf16.msra.mxu1 %v1389_v45 }
 0x126   : > { %1397 = vmatprep.subr.bf16.mxu1 %v1520_v8 }
 0x128   : > { %1307 = vmatmul.mubr.msk.f32.vlgmr.msra.gmra.mrb[8].mxu1 %vm24_vm0, %v1846_v37 }
 0x129   : > { %1399 = vmatpush3.bf16.msra.mxu1 %v1398_v48  ;;  %1328 = vmatprep.mubr.msk.f32.mxu1 %vm1521_vm1, %v1522_v16 }
 0x12a   : > { %1400 = vmatprep.subr.bf16.mxu1 %v1520_v8 }
 0x12d   : > { %1402 = vmatpush3.bf16.msra.mxu1 %v1401_v51 }
 0x130   : > { %1329 = vmatmul.mubr.msk.f32.vlgmr.msra.gmra.mrb[10].mxu1 %vm24_vm0, %v1846_v37 }
 0x1eb   : > { %v530_v60 = vpop.f32.mrb[4].mxu1 }
 0x1ec   : > { %v531_v16 = vadd.f32 %v530_v60, %v457_v52  ;;  %v1264_v62 = vpop.f32.mrb[5].mxu1 }
 0x1ee   : > { %v541_v8 = vadd.f32 %v1098_v61, %v531_v16 }
 0x1f0   : > { %v1099_v63 = vmul.f32 -1.442695, %v541_v8 }
 0x1f2   : > { %1463 = vpow2.f32 %v1099_v63 }
 0x1f3   : > { %v694_v0 = vpop.f32.mrb[6].mxu1 }
 0x1f4   : > { %v695_v5 = vadd.f32 %v694_v0, %v624_v54  ;;  %v1286_v6 = vpop.f32.mrb[7].mxu1 }
 0x1f6   : > { %v706_v7 = vadd.f32 %v1111_v1, %v695_v5  ;;  %v1850_v1 = vmov %v1846_v37 }
 0x1f8   : > { %v1112_v9 = vmul.f32 -1.442695, %v706_v7 }
 0x1fa   : > { %1465 = vpow2.f32 %v1112_v9 }
 0x1fb   : > { %v859_v10 = vpop.f32.mrb[8].mxu1 }
 0x1fc   : > { %v1464_v12 = vpop.eup %1463  ;;  %v860_v3 = vadd.f32 %v859_v10, %v789_v56  ;;  %v1308_v13 = vpop.f32.mrb[9].mxu1 }
 0x1fd   : > { %v545_v14 = vadd.f32 1.0, %v1464_v12 }
 0x1fe   : > { %v871_v15 = vadd.f32 %v1124_v11, %v860_v3 }
 0x1ff   : > { %1467 = vrcp.f32 %v545_v14 }
 0x200   : > { %1469 = vtanh.f32 %v871_v15 }
 0x203   : > { %v1019_v17 = vpop.f32.mrb[10].mxu1 }
 0x204   : > { %v1466_v19 = vpop.eup %1465  ;;  %v1020_v20 = vadd.f32 %v1019_v17, %v949_v58  ;;  %v1330_v21 = vpop.f32.mrb[11].mxu1 }
 0x205   : > { %v710_v22 = vadd.f32 1.0, %v1466_v19 }
 0x206   : > { %v1031_v23 = vadd.f32 %v1136_v18, %v1020_v20 }
 0x207   : > { %1471 = vrcp.f32 %v710_v22 }
 0x208   : > { %v1137_v24 = vmul.f32 -1.442695, %v1031_v23 }
 0x209   : > { %v1468_v25 = vpop.eup %1467 }
 0x20a   : > { %v1470_v26 = vpop.eup %1469  ;;  %1473 = vpow2.f32 %v1137_v24 }
 0x20b   : > { %v1039_v27 = vmul.f32 %v1470_v26, %v1468_v25 }
 0x211   : > { %v1472_v28 = vpop.eup %1471 }
 0x212   : > { %v1038_v29 = vmul.f32 %v1501_v4, %v1472_v28 }
 0x214   : > { %v1474_v30 = vpop.eup %1473  ;;  %v1040_v32 = vadd.f32 %v1039_v27, %v1038_v29  }
 0x215   : > { %v1035_v33 = vadd.f32 1.0, %v1474_v30 }
 0x216   : > { %1475 = vtanh.f32 %v1040_v32  ;;  %v1847_v4 = vmov %v1040_v32  ;;  %1050 = vst.msk [vmem:[#allocation5] sm:$0xff] (%p35_p0), %vm24_vm0, %v1040_v32 }
 0x217   : > { %1477 = vrcp.f32 %v1035_v33 }
 0x21e   :  { %37 = sbr.rel (!%p35_p0) target bundleno = 10 (0xa), region = 65 }
 0x220   : > { %v1476_v34 = vpop.eup %1475 }
 0x221   : > { %v1478_v35 = vpop.eup %1477 }
 0x222   : > { %v1042_v36 = vmul.f32 %v1478_v35, %v1476_v34  }
 0x224   : > { %1045 = vst.msk [vmem:[%s1044_s9] sm:$0xff] %vm24_vm0, %v1042_v36  ;;  %v1848_v3 = vmov %v1042_v36  ;;  %1049 = vst.msk [vmem:[#allocation4] sm:$0xff] (%p35_p0), %vm24_vm0, %v1042_v36 }

</bundles_post_ra>
